<compile_context>
chip_gen: v5e
topology: v5e:2x2
jax: 0.10.0
libtpu: 0.0.40
codegen_flags: <defaults>
</compile_context>

<pallas_src>
import math

import jax
import jax.numpy as jnp
from jax.experimental import pallas as pl
from jax.experimental.pallas import tpu as pltpu

ALPHA = 0.25
GAMMA = 2.0
REDUCTION = "none"  # module default


def _round_up(x, m):
    return -(-x // m) * m


def _chip_generation():
    """Best-effort chip-generation tag: 'v7', 'v6', 'v5', or '' (unknown)."""
    try:
        kind = jax.devices()[0].device_kind.lower()
    except Exception:
        return ""
    if "v7" in kind or "7x" in kind:
        return "v7"
    if "v6" in kind:
        return "v6"
    if "v5" in kind:
        return "v5"
    return ""


def _tile_bytes_and_vmem_limit(gen):
    """(per-operand f32-footprint tile bytes, scoped-VMEM limit or None)."""
    if gen == "v7":
        # 64 MiB physical VMEM / 32 MiB default scoped; 3 ops x 2 bufs x 4 MiB
        # = 24 MiB live -> ask for 40 MiB of scoped VMEM for headroom.
        return 4 * 1024 * 1024, 40 << 20
    if gen == "v6":
        # 128 MiB physical; plenty of headroom at 64 MiB scoped.
        return 4 * 1024 * 1024, 64 << 20
    # v5e and unknown chips: 2 MiB tiles fit the 16 MiB default scoped VMEM
    # (per-step DMA is already ~7 us at ~820 GB/s, bigger tiles buy nothing).
    return 2 * 1024 * 1024, None


def _int_pow(x, k):
    """x**k for small non-negative integer k via plain VPU multiplies."""
    result = None
    base = x
    while k:
        if k & 1:
            result = base if result is None else result * base
        k >>= 1
        if k:
            base = base * base
    return result if result is not None else jnp.ones_like(x)


def _make_focal_loss_kernel(alpha, gamma):
    def kernel(x_ref, t_ref, o_ref):
        # Load in native dtype (bf16 stays bf16 on the wire), f32 math inside.
        x = x_ref[...].astype(jnp.float32)
        t = t_ref[...].astype(jnp.float32)

        # One exp serves both the numerically-stable BCE and the sigmoid:
        #   e       = exp(-|x|)
        #   sigmoid = 1/(1+e)  if x >= 0 else  e/(1+e)
        #   bce     = max(x,0) - x*t + log1p(e)
        e = jnp.exp(-jnp.abs(x))
        d = 1.0 + e
        # Approx EUP reciprocal + one Newton-Raphson step (~1e-7 rel error):
        # moves the divide cost off the EUP and into spare VALU slots.
        r = pl.reciprocal(d, approx=True)
        r = r * (2.0 - d * r)
        p = jnp.where(x >= 0.0, r, e * r)
        ce = jnp.maximum(x, 0.0) - x * t + jnp.log1p(e)

        # 1 - p_t = p + t - 2*p*t  (skip forming p_t; fewer VPU ops)
        one_m_pt = p + t - 2.0 * (p * t)
        if float(gamma) == 2.0:
            mod = one_m_pt * one_m_pt
        elif float(gamma).is_integer() and 0.0 <= gamma <= 8.0:
            mod = _int_pow(one_m_pt, int(gamma))
        else:
            mod = one_m_pt ** gamma  # generic path: exp(gamma*log(u)) on EUP
        loss = ce * mod

        # alpha >= 0 branch, as in torchvision.ops.sigmoid_focal_loss.
        if alpha >= 0:
            # alpha_t = alpha*t + (1-alpha)*(1-t) = (1-alpha) + (2*alpha-1)*t
            alpha_t = (1.0 - alpha) + (2.0 * alpha - 1.0) * t
            loss = alpha_t * loss

        o_ref[...] = loss.astype(o_ref.dtype)

    return kernel


def focal_loss(outputs, targets, alpha=ALPHA, gamma=GAMMA, reduction=REDUCTION):
    """Sigmoid focal loss. reduction='none' returns loss with outputs' shape."""
    assert outputs.shape == targets.shape
    orig_shape = outputs.shape
    out_dtype = outputs.dtype

    n = math.prod(orig_shape) if orig_shape else 1

    if n == 0:
        loss = jnp.zeros(orig_shape, dtype=out_dtype)
    else:
        gen = _chip_generation()
        tile_bytes, vmem_limit = _tile_bytes_and_vmem_limit(gen)

        # Widest lane-dense slab such that n % lanes == 0 (the reshape is a
        # free view, no pad copy).  Fallback: 128 lanes + tail pad.
        lanes = None
        for c in (1024, 512, 256, 128):
            if n % c == 0:
                lanes = c
                break
        if lanes is None:
            lanes = 128
            rows = -(-n // lanes)
            pad = rows * lanes - n
        else:
            rows = n // lanes
            pad = 0

        x = outputs.reshape(-1)
        t = targets.reshape(-1)
        if pad:
            # Only reached when numel is not a multiple of 128 (extra HBM pass).
            x = jnp.pad(x, (0, pad))
            t = jnp.pad(t, (0, pad))
        x2 = x.reshape(rows, lanes)
        t2 = t.reshape(rows, lanes)

        # Tile rows sized against the f32 compute working set (safe for bf16
        # inputs too); blocks are (8,128)-aligned unless they span the full
        # row dim.  The trailing block may be ragged (masked writes).
        tile_elems = tile_bytes // 4
        max_tile_rows = max(8, (tile_elems // lanes) // 8 * 8)

        if rows <= max_tile_rows:
            tile_rows = rows
            grid_steps = 1
            # v7x has 2 TensorCores: split a single-tile problem in two when
            # it stays (8,128)-aligned.  Skipped on v5e/v6e (1 TC -> overhead).
            if gen == "v7" and rows >= 16:
                tile_rows = _round_up(-(-rows // 2), 8)
                grid_steps = -(-rows // tile_rows)
        else:
            grid_steps = -(-rows // max_tile_rows)
            if gen == "v7" and grid_steps % 2:
                grid_steps += 1  # balanced tile counts across the 2 TCs
            tile_rows = min(max_tile_rows, _round_up(-(-rows // grid_steps), 8))
            grid_steps = -(-rows // tile_rows)

        cost = pl.CostEstimate(
            flops=18 * n,
            transcendentals=3 * n,
            bytes_accessed=n
            * (
                jnp.dtype(outputs.dtype).itemsize
                + jnp.dtype(targets.dtype).itemsize
                + jnp.dtype(out_dtype).itemsize
            ),
        )

        out2 = pl.pallas_call(
            _make_focal_loss_kernel(float(alpha), float(gamma)),
            out_shape=jax.ShapeDtypeStruct((rows, lanes), out_dtype),
            grid_spec=pltpu.PrefetchScalarGridSpec(
                num_scalar_prefetch=0,
                grid=(grid_steps,),
                in_specs=[
                    pl.BlockSpec((tile_rows, lanes), lambda i: (i, 0)),
                    pl.BlockSpec((tile_rows, lanes), lambda i: (i, 0)),
                ],
                out_specs=pl.BlockSpec((tile_rows, lanes), lambda i: (i, 0)),
            ),
            compiler_params=pltpu.CompilerParams(
                dimension_semantics=("parallel",),
                vmem_limit_bytes=vmem_limit,
            ),
            cost_estimate=cost,
        )(x2, t2)

        loss = out2.reshape(-1)
        if pad:
            loss = loss[:n]
        loss = loss.reshape(orig_shape)

    if reduction == "none":
        return loss
    elif reduction == "mean":
        # TODO(synk): sum/mean could be fused in-kernel (per-tile partials,
        # masked tail) to skip the full loss writeback; kept wrapper-side
        # since the module default is reduction='none'.
        return jnp.mean(loss)
    elif reduction == "sum":
        return jnp.sum(loss)
    else:
        raise ValueError(f"unknown reduction {reduction!r}")


def _focal_loss_ref(x, t, alpha=ALPHA, gamma=GAMMA):
    # Pure-JAX reference mirroring torchvision.ops.sigmoid_focal_loss.
    x = x.astype(jnp.float32)
    t = t.astype(jnp.float32)
    p = jax.nn.sigmoid(x)
    ce = jnp.maximum(x, 0.0) - x * t + jnp.log1p(jnp.exp(-jnp.abs(x)))
    p_t = p * t + (1 - p) * (1 - t)
    loss = ce * (1 - p_t) ** gamma
    alpha_t = alpha * t + (1 - alpha) * (1 - t)
    return alpha_t * loss


if __name__ == "__main__":
    key = jax.random.PRNGKey(0)
    k1, k2 = jax.random.split(key)

    # NCHW-style logits and binary targets, small shape.
    x = jax.random.normal(k1, (2, 4, 16, 16), dtype=jnp.float32) * 2.0
    t = (jax.random.uniform(k2, (2, 4, 16, 16)) > 0.5).astype(jnp.float32)

    # f32 path
    out = jax.block_until_ready(focal_loss(x, t))
    ref = _focal_loss_ref(x, t)
    assert out.shape == x.shape
    assert jnp.allclose(out, ref, atol=1e-5, rtol=1e-4), float(
        jnp.max(jnp.abs(out - ref))
    )

    # bf16 path (native-dtype DMA in/out, f32 math inside the kernel)
    x_bf = x.astype(jnp.bfloat16)
    t_bf = t.astype(jnp.bfloat16)
    out_bf = jax.block_until_ready(focal_loss(x_bf, t_bf))
    ref_bf = _focal_loss_ref(x_bf, t_bf)
    assert out_bf.dtype == jnp.bfloat16
    assert jnp.allclose(
        out_bf.astype(jnp.float32), ref_bf, atol=3e-2, rtol=3e-2
    ), float(jnp.max(jnp.abs(out_bf.astype(jnp.float32) - ref_bf)))

    # Non-128-multiple shape exercises the ragged / pad fallback path.
    x3 = jax.random.normal(k1, (3, 5, 7), dtype=jnp.float32)
    t3 = (jax.random.uniform(k2, (3, 5, 7)) > 0.5).astype(jnp.float32)
    out3 = jax.block_until_ready(focal_loss(x3, t3))
    ref3 = _focal_loss_ref(x3, t3)
    assert jnp.allclose(out3, ref3, atol=1e-5, rtol=1e-4)

    print("KERNEL_OK")
</pallas_src>

<mosaic_0001>
module attributes {stable_mosaic.version = 11 : i64} {
  func.func @kernel(%arg0: i32, %arg1: memref<2x1024xf32, #tpu.memory_space<vmem>>, %arg2: memref<2x1024xf32, #tpu.memory_space<vmem>>, %arg3: memref<2x1024xf32, #tpu.memory_space<vmem>>) attributes {dimension_semantics = [#tpu.dimension_semantics<parallel>], iteration_bounds = array<i64: 1>, scalar_prefetch = 0 : i64, scratch_operands = 0 : i64, tpu.core_type = #tpu.core_type<tc>, window_params = [{transform_indices = @transform_0, window_bounds = array<i64: 2, 1024>}, {transform_indices = @transform_1, window_bounds = array<i64: 2, 1024>}, {transform_indices = @transform_2, window_bounds = array<i64: 2, 1024>}]} {
    %c0 = arith.constant 0 : index
    %c0_0 = arith.constant 0 : index
    %0 = vector.load %arg1[%c0, %c0_0] : memref<2x1024xf32, #tpu.memory_space<vmem>>, vector<2x1024xf32>
    %c0_1 = arith.constant 0 : index
    %c0_2 = arith.constant 0 : index
    %1 = vector.load %arg2[%c0_1, %c0_2] : memref<2x1024xf32, #tpu.memory_space<vmem>>, vector<2x1024xf32>
    %2 = math.absf %0 : vector<2x1024xf32>
    %cst = arith.constant 0.000000e+00 : f32
    %3 = vector.broadcast %cst : f32 to vector<2x1024xf32>
    %4 = arith.subf %3, %2 : vector<2x1024xf32>
    %5 = math.exp %4 : vector<2x1024xf32>
    %cst_3 = arith.constant 1.000000e+00 : f32
    %6 = vector.broadcast %cst_3 : f32 to vector<2x1024xf32>
    %7 = arith.addf %6, %5 : vector<2x1024xf32>
    %8 = tpu.reciprocal %7 {approx = true} : vector<2x1024xf32> -> vector<2x1024xf32>
    %9 = arith.mulf %7, %8 : vector<2x1024xf32>
    %cst_4 = arith.constant 2.000000e+00 : f32
    %10 = vector.broadcast %cst_4 : f32 to vector<2x1024xf32>
    %11 = arith.subf %10, %9 : vector<2x1024xf32>
    %12 = arith.mulf %8, %11 : vector<2x1024xf32>
    %cst_5 = arith.constant 0.000000e+00 : f32
    %13 = vector.broadcast %cst_5 : f32 to vector<2x1024xf32>
    %14 = arith.cmpf oge, %0, %13 : vector<2x1024xf32>
    %15 = arith.mulf %5, %12 : vector<2x1024xf32>
    %16 = arith.select %14, %12, %15 : vector<2x1024xi1>, vector<2x1024xf32>
    %cst_6 = arith.constant 0.000000e+00 : f32
    %17 = vector.broadcast %cst_6 : f32 to vector<2x1024xf32>
    %18 = arith.maximumf %0, %17 : vector<2x1024xf32>
    %19 = arith.mulf %0, %1 : vector<2x1024xf32>
    %20 = arith.subf %18, %19 : vector<2x1024xf32>
    %21 = math.log1p %5 : vector<2x1024xf32>
    %22 = arith.addf %20, %21 : vector<2x1024xf32>
    %23 = arith.addf %16, %1 : vector<2x1024xf32>
    %24 = arith.mulf %16, %1 : vector<2x1024xf32>
    %cst_7 = arith.constant 2.000000e+00 : f32
    %25 = vector.broadcast %cst_7 : f32 to vector<2x1024xf32>
    %26 = arith.mulf %25, %24 : vector<2x1024xf32>
    %27 = arith.subf %23, %26 : vector<2x1024xf32>
    %28 = arith.mulf %27, %27 : vector<2x1024xf32>
    %29 = arith.mulf %22, %28 : vector<2x1024xf32>
    %cst_8 = arith.constant -5.000000e-01 : f32
    %30 = vector.broadcast %cst_8 : f32 to vector<2x1024xf32>
    %31 = arith.mulf %30, %1 : vector<2x1024xf32>
    %cst_9 = arith.constant 7.500000e-01 : f32
    %32 = vector.broadcast %cst_9 : f32 to vector<2x1024xf32>
    %33 = arith.addf %32, %31 : vector<2x1024xf32>
    %34 = arith.mulf %33, %29 : vector<2x1024xf32>
    %c0_10 = arith.constant 0 : index
    %c0_11 = arith.constant 0 : index
    %35 = vector.load %arg3[%c0_10, %c0_11] : memref<2x1024xf32, #tpu.memory_space<vmem>>, vector<2x1024xf32>
    tpu.vector_store %arg3[%c0_10, %c0_11], %34 {strides = array<i32>} : memref<2x1024xf32, #tpu.memory_space<vmem>>, vector<2x1024xf32>,
    return
  }
  func.func @transform_0(%arg0: i32) -> (i32, i32) {
    %c0_i32 = arith.constant 0 : i32
    %c0_i32_0 = arith.constant 0 : i32
    return %arg0, %c0_i32 : i32, i32
  }
  func.func @transform_1(%arg0: i32) -> (i32, i32) {
    %c0_i32 = arith.constant 0 : i32
    %c0_i32_0 = arith.constant 0 : i32
    return %arg0, %c0_i32 : i32, i32
  }
  func.func @transform_2(%arg0: i32) -> (i32, i32) {
    %c0_i32 = arith.constant 0 : i32
    %c0_i32_0 = arith.constant 0 : i32
    return %arg0, %c0_i32 : i32, i32
  }
}

</mosaic_0001>

<bundles_post_ra>
// kernel: tpu_custom_call.1
= control target key start
LH: loop header
LB: loop body
LE: loop exit
PB: predicated region body
PF: predicated region fallthrough
CT: control target
= control target key end

     0   :  { %7 = vsyncpa [#allocation3], 0  ;;  %s258_s0 = inlined_call_operand.hbm [shape: f32[2,1024], index: 0, kind: input, shape index: {}]   ;;  %s259_s1 = inlined_call_operand.hbm [shape: f32[2,1024], index: 1, kind: input, shape index: {}]   ;;  %s260_s2 = inlined_call_operand.hbm [shape: f32[2,1024], index: 2, kind: output, shape index: {}]  }
   0x1   :  { %8 = vsyncpa [#allocation6], 0 }
   0x2   :  { %9 = vsyncpa [#allocation4], 0  ;;  %s15_s11 = sshll.u32 %s258_s0, 4  ;;  %s225_s12 = smov [#allocation2]   ;;  %s16_s11 = int_to_ptr.hbm [resolvable:$true] %s15_s11 }
   0x3   :  { %s17_s13 = sshll.u32 %s225_s12, 4  ;;  %s26_s16 = sshll.u32 %s259_s1, 4  ;;  %s18_s13 = int_to_ptr.vmem [resolvable:$true] %s17_s13  ;;  %s27_s16 = int_to_ptr.hbm [resolvable:$true] %s26_s16 }
   0x4   :  { %20 = dma.hbm_to_vmem [thread:$0]  %s16_s11, 256, %s18_s13, [#allocation3]  }
   0x5   :  { %s226_s17 = smov [#allocation5]  }
   0x6   :  { %s28_s18 = sshll.u32 %s226_s17, 4  ;;  %s29_s18 = int_to_ptr.vmem [resolvable:$true] %s28_s18 }
   0x7   :  { %31 = dma.hbm_to_vmem [thread:$0]  %s27_s16, 256, %s29_s18, [#allocation6]  }
   0x8   :  { %219 = dma.done.wait [#allocation3], 256  }
   0x9   :  { %220 = vsyncadd [#allocation3], 4294967040 }
   0xa   :  { %221 = dma.done.wait [#allocation6], 256  }
   0xb   :  { %222 = vsyncadd [#allocation6], 4294967040  ;;  %v40_v0 = vld [vmem:[#allocation2] sm:$0xff]  ;;  %v41_v1 = vld [vmem:[#allocation2 + $0x8] sm:$0xff]  ;;  %s227_s0 = smov [#allocation7]   ;;  %s121_s21 = sshll.u32 %s260_s2, 4  ;;  %s122_s21 = int_to_ptr.hbm [resolvable:$true] %s121_s21 }
   0xc   :  { %v44_v2 = vand.u32 2147483647, %v40_v0  ;;  %v45_v3 = vand.u32 2147483647, %v41_v1  ;;  %v42_v22 = vld [vmem:[#allocation5] sm:$0xff]  ;;  %vm62_vm0 = vcmp.ge.f32.partialorder %v40_v0, 0.0 }
   0xd   :  { %v68_v27 = vmax.f32 %v40_v0, 0.0  ;;  %v70_v28 = vmul.f32 %v42_v22, %v40_v0  ;;  %v43_v33 = vld [vmem:[#allocation5 + $0x8] sm:$0xff]  ;;  %vm63_vm2 = vcmp.ge.f32.partialorder %v41_v1, 0.0  ;;  %v69_v36 = vmax.f32 %v41_v1, 0.0  ;;  %s119_s1 = sshll.u32 %s227_s0, 4  ;;  %s120_s1 = int_to_ptr.vmem [resolvable:$true] %s119_s1 }
   0xe   :  { %v46_v4 = vsub.f32 0.0, %v44_v2  ;;  %v47_v5 = vsub.f32 0.0, %v45_v3  ;;  %v71_v37 = vmul.f32 %v43_v33, %v41_v1  ;;  %v106_v46 = vmul.f32 -0.5, %v42_v22 }
   0xf   :  { %v72_v42 = vsub.f32 %v68_v27, %v70_v28  ;;  %v107_v56 = vmul.f32 -0.5, %v43_v33 }
  0x10   :  { %v48_v6 = vmul.f32 1.442695, %v46_v4  ;;  %v50_v7 = vmul.f32 1.442695, %v47_v5  ;;  %v73_v49 = vsub.f32 %v69_v36, %v71_v37  ;;  %v108_v58 = vadd.f32 0.75, %v106_v46 }
  0x11   :  { %v109_v63 = vadd.f32 0.75, %v107_v56 }
  0x12   :  { %135 = vpow2.f32 %v48_v6 }
  0x13   :  { %137 = vpow2.f32 %v50_v7 }
  0x18   :  { %v136_v8 = vpop.eup %135 }
  0x19   :  { %v138_v9 = vpop.eup %137  ;;  %v52_v10 = vadd.f32 1.0, %v136_v8  ;;  %v77_v12 = vmul.f32 -0.5, %v136_v8  ;;  %v80_v21 = vand.u32 2147483647, %v136_v8 }
  0x1a   :  { %v53_v11 = vadd.f32 1.0, %v138_v9  ;;  %v86_v15 = vmul.f32 -0.5, %v138_v9  ;;  %v89_v29 = vand.u32 2147483647, %v138_v9 }
  0x1b   :  { %139 = vrcp.f32 %v52_v10  ;;  %v78_v18 = vadd.f32 1.0, %v77_v12  ;;  %vm249_vm1 = vcmp.lt.f32.partialorder %v80_v21, 0.0004427343 }
  0x1c   :  { %141 = vrcp.f32 %v53_v11  ;;  %v87_v25 = vadd.f32 1.0, %v86_v15  ;;  %vm90_vm3 = vcmp.lt.f32.partialorder %v89_v29, 0.0004427343 }
  0x1d   :  { %143 = vlog2.f32 %v52_v10  ;;  %v79_v32 = vmul.f32 %v136_v8, %v78_v18 }
  0x1e   :  { %145 = vlog2.f32 %v53_v11  ;;  %v88_v41 = vmul.f32 %v138_v9, %v87_v25 }
  0x21   :  { %v140_v13 = vpop.eup %139 }
  0x22   :  { %v56_v14 = vmul.f32 %v140_v13, %v52_v10  ;;  %v142_v16 = vpop.eup %141 }
  0x23   :  { %v57_v19 = vmul.f32 %v142_v16, %v53_v11  ;;  %v144_v20 = vpop.eup %143 }
  0x24   :  { %v58_v17 = vsub.f32 2.0, %v56_v14  ;;  %v146_v26 = vpop.eup %145  ;;  %v76_v31 = vmul.f32 0.6931472, %v144_v20 }
  0x25   :  { %v59_v24 = vsub.f32 2.0, %v57_v19  ;;  %v85_v40 = vmul.f32 0.6931472, %v146_v26 }
  0x26   :  { %v60_v23 = vmul.f32 %v140_v13, %v58_v17  ;;  %v82_v45 = vsel %vm249_vm1, %v79_v32, %v76_v31 }
  0x27   :  { %v61_v34 = vmul.f32 %v142_v16, %v59_v24  ;;  %v91_v52 = vsel %vm90_vm3, %v88_v41, %v85_v40  ;;  %v92_v53 = vadd.f32 %v82_v45, %v72_v42 }
  0x28   :  { %v64_v30 = vmul.f32 %v136_v8, %v60_v23  ;;  %v93_v59 = vadd.f32 %v91_v52, %v73_v49 }
  0x29   :  { %v65_v39 = vmul.f32 %v138_v9, %v61_v34 }
  0x2a   :  { %v66_v38 = vsel %vm62_vm0, %v60_v23, %v64_v30 }
  0x2b   :  { %v94_v43 = vadd.f32 %v66_v38, %v42_v22  ;;  %v96_v44 = vmul.f32 %v66_v38, %v42_v22  ;;  %v67_v47 = vsel %vm63_vm2, %v61_v34, %v65_v39 }
  0x2c   :  { %v95_v50 = vadd.f32 %v67_v47, %v43_v33  ;;  %v97_v51 = vmul.f32 %v67_v47, %v43_v33 }
  0x2d   :  { %v98_v48 = vmul.f32 2.0, %v96_v44 }
  0x2e   :  { %v99_v55 = vmul.f32 2.0, %v97_v51 }
  0x2f   :  { %v100_v54 = vsub.f32 %v94_v43, %v98_v48 }
  0x30   :  { %v101_v60 = vsub.f32 %v95_v50, %v99_v55 }
  0x31   :  { %v102_v57 = vmul.f32 %v100_v54, %v100_v54 }
  0x32   :  { %v103_v62 = vmul.f32 %v101_v60, %v101_v60 }
  0x33   :  { %v104_v61 = vmul.f32 %v102_v57, %v92_v53 }
  0x34   :  { %v105_v1 = vmul.f32 %v103_v62, %v93_v59 }
  0x35   :  { %v110_v0 = vmul.f32 %v108_v58, %v104_v61 }
  0x36   :  { %v111_v2 = vmul.f32 %v109_v63, %v105_v1 }
  0x37   :  { %112 = vst [vmem:[#allocation7] sm:$0xff] %v110_v0 }
  0x38   :  { %113 = vst [vmem:[#allocation7 + $0x8] sm:$0xff] %v111_v2 }
  0x39   :  { %124 = dma.vmem_to_hbm [thread:$0]  %s120_s1, 256, %s122_s21, [#allocation4]  }
  0x3a   :  { %223 = dma.done.wait [#allocation4], 256  }
  0x3b   :  { %224 = vsyncadd [#allocation4], 4294967040 }
  0x3c   :  { %129 = vsyncpa [#allocation3], 1 }
  0x3d   :  { %130 = vsyncpa [#allocation6], 1 }
  0x3e   :  { %131 = vsyncpa [#allocation4], 1 }

</bundles_post_ra>
